<compile_context>
chip_gen: v6e
topology: v6e:2x2x1
jax: 0.10.0
libtpu: 0.0.40
codegen_flags: <defaults>
</compile_context>

<pallas_src>
import jax
import jax.numpy as jnp
import numpy as np
from jax import lax
from jax.experimental import pallas as pl
from jax.experimental.pallas import tpu as pltpu


def xblock_kernel(x_ref, mdw_ref, b1_ref, mpw_ref, b2_ref, o_ref, xp_ref):
    """Process `nb` images per grid step, all in lane-merged (H, W*C) layout.

    x_ref  : (nb, H, W*in_ch)        un-padded, un-replicated input
    mdw_ref: (3, W*in_ch, W*out_ch)  per-kh lane-mixing matrices
                                     (channel replication + kw shifts +
                                      3x3 taps + BN1 scale, all folded in)
    b1_ref : (1, W*out_ch)           folded BN1 bias, tiled across w
    mpw_ref: (W*out_ch, W*out_ch)    block-diag 1x1-conv weight * BN2 scale
    b2_ref : (1, W*out_ch)           folded BN2 bias (1x1-conv bias included)
    o_ref  : (nb, H, W*out_ch)       output
    xp_ref : (nb, H+2, W*in_ch)      VMEM scratch with zero halo rows
    """
    nb, H, Win = x_ref.shape
    Wout = o_ref.shape[2]
    zrow = jnp.zeros((1, Win), jnp.float32)

    for b in range(nb):                      # static unroll over images in block
        xp_b = xp_ref.at[b]                  # (H+2, Win) ref view
        xp_b[0:1, :] = zrow                  # top zero-pad row
        xp_b[H + 1:H + 2, :] = zrow          # bottom zero-pad row
        xp_b[1:H + 1, :] = x_ref[b]

        # grouped 3x3 conv (+ BN1 scale) as three lane-mixing MXU matmuls
        acc = jnp.zeros((H, Wout), jnp.float32)
        for kh in range(3):
            acc = acc + jnp.dot(xp_b[kh:kh + H, :], mdw_ref[kh],
                                preferred_element_type=jnp.float32)

        # BN1 bias + ReLU
        h = jnp.maximum(acc + b1_ref[...], 0.0)

        # 1x1 conv (+ BN2 scale) as a block-diagonal lane-dense matmul
        y = jnp.dot(h, mpw_ref[...], preferred_element_type=jnp.float32)

        # BN2 bias + ReLU, lane-dense store
        y = jnp.maximum(y + b2_ref[...], 0.0)
        o_ref[b] = y.astype(o_ref.dtype)


def _fold_params(params, in_ch, out_ch, W, eps=1e-5):
    """Fold BN scales / biases into lane-mixing conv matrices (wrapper glue)."""
    (w_dw, g1, be1, mu1, var1, w_pw, b_pw, g2, be2, mu2, var2) = params
    m = out_ch // in_ch

    s1 = g1 / jnp.sqrt(var1 + eps)
    bi1 = be1 - mu1 * s1
    s2 = g2 / jnp.sqrt(var2 + eps)
    bi2 = b_pw * s2 + be2 - mu2 * s2

    # channel-replication matrix: rep[c, o] = 1 iff o // m == c
    rep = jnp.kron(jnp.eye(in_ch, dtype=jnp.float32),
                   jnp.ones((1, m), jnp.float32))                 # (in_ch, out_ch)

    # per-kh lane-mixing matrices: replication + kw shift + tap + BN1 scale
    mdw_rows = []
    for kh in range(3):
        acc = jnp.zeros((W * in_ch, W * out_ch), jnp.float32)
        for kw in range(3):
            taps = s1 * w_dw[:, 0, kh, kw]                        # (out_ch,)
            shift = jnp.eye(W, k=1 - kw, dtype=jnp.float32)       # banded (W, W)
            acc = acc + jnp.kron(shift, rep * taps[None, :])
        mdw_rows.append(acc)
    mdw = jnp.stack(mdw_rows, axis=0)                             # (3, W*in, W*out)

    # block-diagonal 1x1 conv weight with BN2 scale folded in
    mpw = jnp.kron(jnp.eye(W, dtype=jnp.float32),
                   w_pw.T * s2[None, :])                          # (W*out, W*out)

    b1row = jnp.tile(bi1, W).reshape(1, W * out_ch)
    b2row = jnp.tile(bi2, W).reshape(1, W * out_ch)
    return mdw, b1row, mpw, b2row


def _pick_nb(n, per_image_bytes, vmem_budget=2 << 20):
    """Largest nb dividing n that fits the budget and keeps >= 2 grid steps."""
    nb = 1
    for cand in range(1, n + 1):
        if n % cand != 0:
            continue
        if cand * per_image_bytes > vmem_budget:
            continue
        if n >= 2 and n // cand < 2:
            continue
        nb = cand
    return nb


def single_unit_xblock(x_nhwc, params, in_ch, out_ch):
    """x_nhwc: (N, H, W, in_ch) float32 -> (N, H, W, out_ch) float32."""
    N, H, W, _ = x_nhwc.shape
    Win = W * in_ch
    Wout = W * out_ch

    mdw, b1row, mpw, b2row = _fold_params(params, in_ch, out_ch, W)

    # (N,H,W,C) -> (N,H,W*C): free row-major reshape, no extra HBM pass.
    x2d = x_nhwc.reshape(N, H, Win)

    per_image_bytes = 4 * (H * Win + H * Wout + (H + 2) * Win) * 2  # dbl-buffered
    nb = _pick_nb(N, per_image_bytes)
    grid = (N // nb,)

    out2d = pl.pallas_call(
        xblock_kernel,
        out_shape=jax.ShapeDtypeStruct((N, H, Wout), jnp.float32),
        grid_spec=pltpu.PrefetchScalarGridSpec(
            num_scalar_prefetch=0,
            grid=grid,
            in_specs=[
                pl.BlockSpec((nb, H, Win), lambda n: (n, 0, 0)),
                pl.BlockSpec((3, Win, Wout), lambda n: (0, 0, 0)),
                pl.BlockSpec((1, Wout), lambda n: (0, 0)),
                pl.BlockSpec((Wout, Wout), lambda n: (0, 0)),
                pl.BlockSpec((1, Wout), lambda n: (0, 0)),
            ],
            out_specs=pl.BlockSpec((nb, H, Wout), lambda n: (n, 0, 0)),
            scratch_shapes=[pltpu.VMEM((nb, H + 2, Win), jnp.float32)],
        ),
        compiler_params=pltpu.CompilerParams(dimension_semantics=("parallel",)),
    )(x2d, mdw, b1row, mpw, b2row)

    return out2d.reshape(N, H, W, out_ch)


def reference_jax(x_nhwc, params, in_ch, out_ch):
    """Pure-JAX reference of the module forward (eval-mode BN)."""
    eps = 1e-5
    (w_dw, g1, be1, mu1, var1, w_pw, b_pw, g2, be2, mu2, var2) = params

    # grouped 3x3 conv: HWIO weight (3,3,1,out_ch)
    w_hwio = jnp.transpose(w_dw, (2, 3, 1, 0))
    y = lax.conv_general_dilated(
        x_nhwc, w_hwio, window_strides=(1, 1), padding="SAME",
        feature_group_count=in_ch,
        dimension_numbers=("NHWC", "HWIO", "NHWC"))
    y = (y - mu1) / jnp.sqrt(var1 + eps) * g1 + be1
    y = jnp.maximum(y, 0.0)
    # 1x1 conv
    y = jnp.einsum("nhwi,oi->nhwo", y, w_pw) + b_pw
    y = (y - mu2) / jnp.sqrt(var2 + eps) * g2 + be2
    return jnp.maximum(y, 0.0)


def make_params(key, in_ch, out_ch):
    ks = jax.random.split(key, 8)
    w_dw = jax.random.normal(ks[0], (out_ch, 1, 3, 3), jnp.float32) * 0.2
    g1 = 1.0 + 0.1 * jax.random.normal(ks[1], (out_ch,), jnp.float32)
    be1 = 0.1 * jax.random.normal(ks[2], (out_ch,), jnp.float32)
    mu1 = 0.05 * jax.random.normal(ks[3], (out_ch,), jnp.float32)
    var1 = 1.0 + 0.1 * jax.random.uniform(ks[4], (out_ch,), jnp.float32)
    w_pw = jax.random.normal(ks[5], (out_ch, out_ch), jnp.float32) * 0.2
    b_pw = 0.1 * jax.random.normal(ks[6], (out_ch,), jnp.float32)
    g2 = 1.0 + 0.1 * jax.random.normal(ks[7], (out_ch,), jnp.float32)
    be2 = jnp.linspace(-0.1, 0.1, out_ch, dtype=jnp.float32)
    mu2 = jnp.linspace(-0.05, 0.05, out_ch, dtype=jnp.float32)
    var2 = jnp.linspace(0.9, 1.1, out_ch, dtype=jnp.float32)
    return (w_dw, g1, be1, mu1, var1, w_pw, b_pw, g2, be2, mu2, var2)


if __name__ == "__main__":
    in_ch, out_ch = 4, 8          # out_ch must be a multiple of in_ch (groups=in_ch)
    N, H, W = 2, 16, 16           # W * out_ch = 128 -> fully lane-dense tiles

    key = jax.random.PRNGKey(0)
    k_x, k_p = jax.random.split(key)
    x_nchw = jax.random.normal(k_x, (N, in_ch, H, W), jnp.float32)   # PyTorch layout
    params = make_params(k_p, in_ch, out_ch)

    x_nhwc = jnp.transpose(x_nchw, (0, 2, 3, 1))

    out = single_unit_xblock(x_nhwc, params, in_ch, out_ch)
    out = jax.block_until_ready(out)

    ref = reference_jax(x_nhwc, params, in_ch, out_ch)
    np.testing.assert_allclose(np.asarray(out), np.asarray(ref), rtol=5e-4, atol=5e-4)

    print("KERNEL_OK")
</pallas_src>

<mosaic_0001>
module attributes {stable_mosaic.version = 11 : i64} {
  func.func @xblock_kernel(%arg0: i32, %arg1: memref<1x16x64xf32, #tpu.memory_space<vmem>>, %arg2: memref<3x64x128xf32, #tpu.memory_space<vmem>>, %arg3: memref<1x128xf32, #tpu.memory_space<vmem>>, %arg4: memref<128x128xf32, #tpu.memory_space<vmem>>, %arg5: memref<1x128xf32, #tpu.memory_space<vmem>>, %arg6: memref<1x16x128xf32, #tpu.memory_space<vmem>>, %arg7: memref<1x18x64xf32, #tpu.memory_space<vmem>>) attributes {dimension_semantics = [#tpu.dimension_semantics<parallel>], iteration_bounds = array<i64: 2>, scalar_prefetch = 0 : i64, scratch_operands = 1 : i64, tpu.core_type = #tpu.core_type<tc>, window_params = [{transform_indices = @transform_0, window_bounds = array<i64: 1, 16, 64>}, {pipeline_mode = #tpu.pipeline_mode<synchronous>, transform_indices = @transform_1, window_bounds = array<i64: 3, 64, 128>}, {pipeline_mode = #tpu.pipeline_mode<synchronous>, transform_indices = @transform_2, window_bounds = array<i64: 1, 128>}, {pipeline_mode = #tpu.pipeline_mode<synchronous>, transform_indices = @transform_3, window_bounds = array<i64: 128, 128>}, {pipeline_mode = #tpu.pipeline_mode<synchronous>, transform_indices = @transform_4, window_bounds = array<i64: 1, 128>}, {transform_indices = @transform_5, window_bounds = array<i64: 1, 16, 128>}]} {
    %cst = arith.constant 0.000000e+00 : f32
    %0 = vector.broadcast %cst : f32 to vector<1x64xf32>
    %c0_i32 = arith.constant 0 : i32
    %c0_i32_0 = arith.constant 0 : i32
    %c0_i32_1 = arith.constant 0 : i32
    %1 = tpu.memref_slice %arg7[%c0_i32, %c0_i32_0, %c0_i32_1] : memref<1x18x64xf32, #tpu.memory_space<vmem>> -> memref<1x18x64xf32, #tpu.memory_space<vmem>>
    %2 = tpu.memref_squeeze %1 : memref<1x18x64xf32, #tpu.memory_space<vmem>> -> memref<18x64xf32, #tpu.memory_space<vmem>>
    %c0 = arith.constant 0 : index
    %c0_2 = arith.constant 0 : index
    %3 = vector.load %2[%c0, %c0_2] : memref<18x64xf32, #tpu.memory_space<vmem>>, vector<1x64xf32>
    tpu.vector_store %2[%c0, %c0_2], %0 {strides = array<i32>} : memref<18x64xf32, #tpu.memory_space<vmem>>, vector<1x64xf32>,
    %c0_i32_3 = arith.constant 0 : i32
    %c0_i32_4 = arith.constant 0 : i32
    %c0_i32_5 = arith.constant 0 : i32
    %4 = tpu.memref_slice %arg7[%c0_i32_3, %c0_i32_4, %c0_i32_5] : memref<1x18x64xf32, #tpu.memory_space<vmem>> -> memref<1x18x64xf32, #tpu.memory_space<vmem>>
    %5 = tpu.memref_squeeze %4 : memref<1x18x64xf32, #tpu.memory_space<vmem>> -> memref<18x64xf32, #tpu.memory_space<vmem>>
    %c17 = arith.constant 17 : index
    %c0_6 = arith.constant 0 : index
    %6 = vector.load %5[%c17, %c0_6] : memref<18x64xf32, #tpu.memory_space<vmem>>, vector<1x64xf32>
    tpu.vector_store %5[%c17, %c0_6], %0 {strides = array<i32>} : memref<18x64xf32, #tpu.memory_space<vmem>>, vector<1x64xf32>,
    %c0_7 = arith.constant 0 : index
    %c0_8 = arith.constant 0 : index
    %c0_9 = arith.constant 0 : index
    %7 = vector.load %arg1[%c0_7, %c0_8, %c0_9] : memref<1x16x64xf32, #tpu.memory_space<vmem>>, vector<1x16x64xf32>
    %8 = vector.shape_cast %7 : vector<1x16x64xf32> to vector<16x64xf32>
    %c0_i32_10 = arith.constant 0 : i32
    %c0_i32_11 = arith.constant 0 : i32
    %c0_i32_12 = arith.constant 0 : i32
    %9 = tpu.memref_slice %arg7[%c0_i32_10, %c0_i32_11, %c0_i32_12] : memref<1x18x64xf32, #tpu.memory_space<vmem>> -> memref<1x18x64xf32, #tpu.memory_space<vmem>>
    %10 = tpu.memref_squeeze %9 : memref<1x18x64xf32, #tpu.memory_space<vmem>> -> memref<18x64xf32, #tpu.memory_space<vmem>>
    %c1 = arith.constant 1 : index
    %c0_13 = arith.constant 0 : index
    %11 = vector.load %10[%c1, %c0_13] : memref<18x64xf32, #tpu.memory_space<vmem>>, vector<16x64xf32>
    tpu.vector_store %10[%c1, %c0_13], %8 {strides = array<i32>} : memref<18x64xf32, #tpu.memory_space<vmem>>, vector<16x64xf32>,
    %cst_14 = arith.constant 0.000000e+00 : f32
    %12 = vector.broadcast %cst_14 : f32 to vector<16x128xf32>
    %c0_i32_15 = arith.constant 0 : i32
    %c0_i32_16 = arith.constant 0 : i32
    %c0_i32_17 = arith.constant 0 : i32
    %13 = tpu.memref_slice %arg7[%c0_i32_15, %c0_i32_16, %c0_i32_17] : memref<1x18x64xf32, #tpu.memory_space<vmem>> -> memref<1x18x64xf32, #tpu.memory_space<vmem>>
    %14 = tpu.memref_squeeze %13 : memref<1x18x64xf32, #tpu.memory_space<vmem>> -> memref<18x64xf32, #tpu.memory_space<vmem>>
    %c0_18 = arith.constant 0 : index
    %c0_19 = arith.constant 0 : index
    %15 = vector.load %14[%c0_18, %c0_19] : memref<18x64xf32, #tpu.memory_space<vmem>>, vector<16x64xf32>
    %c0_20 = arith.constant 0 : index
    %c0_21 = arith.constant 0 : index
    %c0_22 = arith.constant 0 : index
    %16 = vector.load %arg2[%c0_20, %c0_21, %c0_22] : memref<3x64x128xf32, #tpu.memory_space<vmem>>, vector<1x64x128xf32>
    %17 = vector.shape_cast %16 : vector<1x64x128xf32> to vector<64x128xf32>
    %cst_23 = arith.constant dense<0.000000e+00> : vector<16x128xf32>
    %18 = tpu.matmul %15, %17, %cst_23 {dimension_numbers = #tpu.dot_dimension_numbers<[1], [0], [0], [1], [0, 0, 1, 1], [], []>} : vector<16x64xf32>, vector<64x128xf32>, vector<16x128xf32> -> vector<16x128xf32>
    %19 = arith.addf %12, %18 : vector<16x128xf32>
    %c0_i32_24 = arith.constant 0 : i32
    %c0_i32_25 = arith.constant 0 : i32
    %c0_i32_26 = arith.constant 0 : i32
    %20 = tpu.memref_slice %arg7[%c0_i32_24, %c0_i32_25, %c0_i32_26] : memref<1x18x64xf32, #tpu.memory_space<vmem>> -> memref<1x18x64xf32, #tpu.memory_space<vmem>>
    %21 = tpu.memref_squeeze %20 : memref<1x18x64xf32, #tpu.memory_space<vmem>> -> memref<18x64xf32, #tpu.memory_space<vmem>>
    %c1_27 = arith.constant 1 : index
    %c0_28 = arith.constant 0 : index
    %22 = vector.load %21[%c1_27, %c0_28] : memref<18x64xf32, #tpu.memory_space<vmem>>, vector<16x64xf32>
    %c1_29 = arith.constant 1 : index
    %c0_30 = arith.constant 0 : index
    %c0_31 = arith.constant 0 : index
    %23 = vector.load %arg2[%c1_29, %c0_30, %c0_31] : memref<3x64x128xf32, #tpu.memory_space<vmem>>, vector<1x64x128xf32>
    %24 = vector.shape_cast %23 : vector<1x64x128xf32> to vector<64x128xf32>
    %cst_32 = arith.constant dense<0.000000e+00> : vector<16x128xf32>
    %25 = tpu.matmul %22, %24, %cst_32 {dimension_numbers = #tpu.dot_dimension_numbers<[1], [0], [0], [1], [0, 0, 1, 1], [], []>} : vector<16x64xf32>, vector<64x128xf32>, vector<16x128xf32> -> vector<16x128xf32>
    %26 = arith.addf %19, %25 : vector<16x128xf32>
    %c0_i32_33 = arith.constant 0 : i32
    %c0_i32_34 = arith.constant 0 : i32
    %c0_i32_35 = arith.constant 0 : i32
    %27 = tpu.memref_slice %arg7[%c0_i32_33, %c0_i32_34, %c0_i32_35] : memref<1x18x64xf32, #tpu.memory_space<vmem>> -> memref<1x18x64xf32, #tpu.memory_space<vmem>>
    %28 = tpu.memref_squeeze %27 : memref<1x18x64xf32, #tpu.memory_space<vmem>> -> memref<18x64xf32, #tpu.memory_space<vmem>>
    %c2 = arith.constant 2 : index
    %c0_36 = arith.constant 0 : index
    %29 = vector.load %28[%c2, %c0_36] : memref<18x64xf32, #tpu.memory_space<vmem>>, vector<16x64xf32>
    %c2_37 = arith.constant 2 : index
    %c0_38 = arith.constant 0 : index
    %c0_39 = arith.constant 0 : index
    %30 = vector.load %arg2[%c2_37, %c0_38, %c0_39] : memref<3x64x128xf32, #tpu.memory_space<vmem>>, vector<1x64x128xf32>
    %31 = vector.shape_cast %30 : vector<1x64x128xf32> to vector<64x128xf32>
    %cst_40 = arith.constant dense<0.000000e+00> : vector<16x128xf32>
    %32 = tpu.matmul %29, %31, %cst_40 {dimension_numbers = #tpu.dot_dimension_numbers<[1], [0], [0], [1], [0, 0, 1, 1], [], []>} : vector<16x64xf32>, vector<64x128xf32>, vector<16x128xf32> -> vector<16x128xf32>
    %33 = arith.addf %26, %32 : vector<16x128xf32>
    %c0_41 = arith.constant 0 : index
    %c0_42 = arith.constant 0 : index
    %34 = vector.load %arg3[%c0_41, %c0_42] : memref<1x128xf32, #tpu.memory_space<vmem>>, vector<1x128xf32>
    %35 = vector.broadcast %34 : vector<1x128xf32> to vector<16x128xf32>
    %36 = arith.addf %33, %35 : vector<16x128xf32>
    %cst_43 = arith.constant 0.000000e+00 : f32
    %37 = vector.broadcast %cst_43 : f32 to vector<16x128xf32>
    %38 = arith.maximumf %36, %37 : vector<16x128xf32>
    %c0_44 = arith.constant 0 : index
    %c0_45 = arith.constant 0 : index
    %39 = vector.load %arg4[%c0_44, %c0_45] : memref<128x128xf32, #tpu.memory_space<vmem>>, vector<128x128xf32>
    %cst_46 = arith.constant dense<0.000000e+00> : vector<16x128xf32>
    %40 = tpu.matmul %38, %39, %cst_46 {dimension_numbers = #tpu.dot_dimension_numbers<[1], [0], [0], [1], [0, 0, 1, 1], [], []>} : vector<16x128xf32>, vector<128x128xf32>, vector<16x128xf32> -> vector<16x128xf32>
    %c0_47 = arith.constant 0 : index
    %c0_48 = arith.constant 0 : index
    %41 = vector.load %arg5[%c0_47, %c0_48] : memref<1x128xf32, #tpu.memory_space<vmem>>, vector<1x128xf32>
    %42 = vector.broadcast %41 : vector<1x128xf32> to vector<16x128xf32>
    %43 = arith.addf %40, %42 : vector<16x128xf32>
    %cst_49 = arith.constant 0.000000e+00 : f32
    %44 = vector.broadcast %cst_49 : f32 to vector<16x128xf32>
    %45 = arith.maximumf %43, %44 : vector<16x128xf32>
    %c0_50 = arith.constant 0 : index
    %c0_51 = arith.constant 0 : index
    %c0_52 = arith.constant 0 : index
    %46 = vector.load %arg6[%c0_50, %c0_51, %c0_52] : memref<1x16x128xf32, #tpu.memory_space<vmem>>, vector<1x16x128xf32>
    %47 = vector.shape_cast %46 : vector<1x16x128xf32> to vector<16x128xf32>
    %48 = vector.shape_cast %45 : vector<16x128xf32> to vector<1x16x128xf32>
    tpu.vector_store %arg6[%c0_50, %c0_51, %c0_52], %48 {strides = array<i32>} : memref<1x16x128xf32, #tpu.memory_space<vmem>>, vector<1x16x128xf32>,
    return
  }
  func.func @transform_0(%arg0: i32) -> (i32, i32, i32) {
    %c0_i32 = arith.constant 0 : i32
    %c0_i32_0 = arith.constant 0 : i32
    %c0_i32_1 = arith.constant 0 : i32
    return %arg0, %c0_i32, %c0_i32_0 : i32, i32, i32
  }
  func.func @transform_1(%arg0: i32) -> (i32, i32, i32) {
    %c0_i32 = arith.constant 0 : i32
    %c0_i32_0 = arith.constant 0 : i32
    %c0_i32_1 = arith.constant 0 : i32
    %c0_i32_2 = arith.constant 0 : i32
    return %c0_i32, %c0_i32_0, %c0_i32_1 : i32, i32, i32
  }
  func.func @transform_2(%arg0: i32) -> (i32, i32) {
    %c0_i32 = arith.constant 0 : i32
    %c0_i32_0 = arith.constant 0 : i32
    %c0_i32_1 = arith.constant 0 : i32
    return %c0_i32, %c0_i32_0 : i32, i32
  }
  func.func @transform_3(%arg0: i32) -> (i32, i32) {
    %c0_i32 = arith.constant 0 : i32
    %c0_i32_0 = arith.constant 0 : i32
    %c0_i32_1 = arith.constant 0 : i32
    return %c0_i32, %c0_i32_0 : i32, i32
  }
  func.func @transform_4(%arg0: i32) -> (i32, i32) {
    %c0_i32 = arith.constant 0 : i32
    %c0_i32_0 = arith.constant 0 : i32
    %c0_i32_1 = arith.constant 0 : i32
    return %c0_i32, %c0_i32_0 : i32, i32
  }
  func.func @transform_5(%arg0: i32) -> (i32, i32, i32) {
    %c0_i32 = arith.constant 0 : i32
    %c0_i32_0 = arith.constant 0 : i32
    %c0_i32_1 = arith.constant 0 : i32
    return %arg0, %c0_i32, %c0_i32_0 : i32, i32, i32
  }
}

</mosaic_0001>

<bundles_post_ra>
// kernel: tpu_custom_call.1
= control target key start
LH: loop header
LB: loop body
LE: loop exit
PB: predicated region body
PF: predicated region fallthrough
CT: control target
= control target key end

     0   :  { %10 = vsyncpa [#allocation4], 0  ;;  %s1420_s0 = inlined_call_operand.hbm [shape: f32[2,16,64], index: 0, kind: input, shape index: {}]   ;;  %s1421_s1 = inlined_call_operand.hbm [shape: f32[3,64,128], index: 1, kind: input, shape index: {}]   ;;  %s1422_s2 = inlined_call_operand.vmem [shape: f32[1,128], index: 2, kind: input, shape index: {}]   ;;  %s1423_s3 = inlined_call_operand.hbm [shape: f32[128,128], index: 3, kind: input, shape index: {}]   ;;  %s1424_s4 = inlined_call_operand.vmem [shape: f32[1,128], index: 4, kind: input, shape index: {}]   ;;  %s1425_s5 = inlined_call_operand.hbm [shape: f32[2,16,128], index: 5, kind: output, shape index: {}]  }
   0x1   :  { %12 = vsyncpa [#allocation4 + $0x1], 0 }
   0x2   :  { %13 = vsyncpa [#allocation7], 0 }
   0x3   :  { %14 = vsyncpa [#allocation5], 0 }
   0x4   :  { %16 = vsyncpa [#allocation5 + $0x1], 0  ;;  %s1205_s18 = smov 0   ;;  %s1207_s19 = smov 0  }
   0x5   :  { %s1209_s20 = smov 0   ;;  %s1211_s21 = smov 0  }
   0x6 LB: > { %s1226_s22 = sadd.s32 4294967295, %s1164_s21   ;;  %s776_s23 = sadd.s32 4294967294, %s1164_s21   ;;  %s1164_s21 = sphi %s1211_s21, %s1448_s21   ;;  %s1160_s20 = sphi %s1209_s20, %s1447_s20   ;;  %s1156_s19 = sphi %s1207_s19, %s1446_s19   ;;  %s1152_s18 = sphi %s1205_s18, %s1445_s18  }
   0x7   : > { %p42_p0 = scmp.ne.s32.totalorder %s1156_s19, %s1152_s18  ;;  %p1426_p1 = scmp.eq.s32.totalorder %s1226_s22, 0 }
   0x8   : > { %p150_p2 = scmp.eq.s32.totalorder %s1226_s22, 1  ;;  %p156_p3 = scmp.eq.s32.totalorder %s776_s23, 1 }
   0x9   : > { %p1235_p4 = por %p1426_p1, %p42_p0  ;;  %p777_p5 = scmp.ge.s32.totalorder %s1164_s21, 1 }
   0xa   : > { %p1240_p6 = por %p156_p3, %p42_p0  ;;  %p163_p7 = scmp.lt.s32.totalorder %s1164_s21, 3 }
   0xb   : > { %s1431_s24 = scalar_select %p1235_p4, 1, 0 }
   0xc   : > { %s1432_s25 = scalar_select %p1240_p6, 1, 0 }
   0xd   : > { %p1245_p8 = pnand %p777_p5, %p163_p7  ;;  %s1166_s27 = smov [#allocation6]  }
   0xe   : > { %s175_s28 = sshll.u32 %s1166_s27, 4  ;;  %s1167_s30 = smov [#allocation8]   ;;  %s176_s28 = int_to_ptr.vmem [resolvable:$true] %s175_s28 }
   0xf   : > { %s1433_s26 = scalar_select %p1245_p8, 1, 0 }
  0x10   : > { %p956_p9 = pneg %p1245_p8  ;;  %s191_s6 = sshll.u32 %s1167_s30, 4  ;;  %s192_s6 = int_to_ptr.vmem [resolvable:$true] %s191_s6 }
  0x11   : > { %s1027_s7 = scalar_lea.vmem %s176_s28, 3072  ;;  %p1035_p5 = scmp.lt.s32.totalorder %s176_s28, %s176_s28 }
  0x12   : > { %p1254_p11 = pnand %p956_p9, %p1426_p1  ;;  %p1028_p13 = scmp.ne.s32.totalorder %s176_s28, %s1027_s7 }
  0x13   : > { %p1036_p7 = scmp.lt.s32.totalorder %s1027_s7, %s1027_s7 }
  0x14   : > { %p1018_p12 = pneg %p1254_p11 }
  0x15   : > { %p1037_p10 = por %p1036_p7, %p1035_p5 }
  0x16   : > { %p1030_p0 = pnand %p1028_p13, %p1018_p12 }
  0x18   : > { %p1031_p3 = pneg %p1030_p0 }
  0x1a   : > { %p1038_p9 = pnand %p1037_p10, %p1031_p3 }
  0x1c   : > { %1041 = shalt.err (!%p1038_p9)
}
  0x1d   : > { %s1427_s8 = smov 128   ;;  %s1169_s9 = smov 8  }
  0x1e   : > { %959 = dma.hbm_to_vmem [thread:$0]  (!%p1254_p11), %s1421_s1, 3072, %s176_s28, [#allocation7], %s1427_s8, %s1427_s8, %s1169_s9  }
  0x1f   : > { %s1053_s12 = scalar_lea.vmem %s192_s6, 2048  ;;  %p1061_p10 = scmp.lt.s32.totalorder %s192_s6, %s192_s6 }
  0x20   : > { %p1054_p13 = scmp.ne.s32.totalorder %s192_s6, %s1053_s12  ;;  %p1062_p3 = scmp.lt.s32.totalorder %s1053_s12, %s1053_s12 }
  0x22   : > { %p1056_p0 = pnand %p1054_p13, %p1018_p12  ;;  %p1063_p7 = por %p1062_p3, %p1061_p10 }
  0x24   : > { %p1057_p5 = pneg %p1056_p0 }
  0x26   : > { %p1064_p9 = pnand %p1063_p7, %p1057_p5 }
  0x28   : > { %1067 = shalt.err (!%p1064_p9)
}
  0x29   : > { %962 = dma.hbm_to_vmem [thread:$0]  (!%p1254_p11), %s1423_s3, 2048, %s192_s6, [#allocation7], %s1427_s8, %s1427_s8, %s1169_s9  }
  0x2a   : > { %s1283_s15 = sadd.s32 1, %s1164_s21   ;;  %s29_s16 = sadd.s32 1, %s1160_s20 }
  0x2b   : > { %s26_s17 = ssub.s32 %s1164_s21, %s1283_s15  ;;  %p36_p12 = scmp.ne.s32.totalorder %s1160_s20, %s1156_s19 }
  0x2c   : > { %p27_p13 = scmp.eq.s32.totalorder %s26_s17, 0  ;;  %p37_p0 = scmp.eq.s32.totalorder %s1164_s21, 0 }
  0x2d   : > { %p1293_p5 = por %p150_p2, %p36_p12  ;;  %p973_p10 = scmp.lt.s32.totalorder %s1164_s21, 2 }
  0x2e   : > { %s1299_s27 = scalar_select %p27_p13, %s1160_s20, %s29_s16  }
  0x2f   : > { %s1435_s23 = scalar_select %p1293_p5, 1, 0 }
  0x30   : > { %p38_p3 = por %p37_p0, %p36_p12  ;;  %s208_s28 = sand.u32 1, %s1160_s20  }
  0x31   : > { %s781_s29 = sshll.u32 %s208_s28, 4  ;;  %s802_s30 = sshll.u32 %s1164_s21, 8 }
  0x32   : > { %s1306_s10 = scalar_lea.hbm %s1420_s0, %s802_s30  ;;  %s212_s11 = scalar_lea.vmem [#allocation3], %s781_s29 }
  0x33   : > { %s219_s12 = sshll.u32 %s212_s11, 4  ;;  %p1310_p2 = pnand %p973_p10, %p38_p3  ;;  %s1308_s12 = int_to_ptr.vmem [resolvable:$true] %s219_s12 }
  0x34   : > { %s1314_s14 = scalar_lea.sflag [#allocation4], %s208_s28  ;;  %s1068_s16 = scalar_lea.hbm %s1306_s10, 256 }
  0x35   : > { %p1069_p11 = scmp.ne.s32.totalorder %s1306_s10, %s1068_s16  ;;  %p1070_p7 = pneg %p1310_p2 }
  0x36   : > { %s1073_s29 = scalar_lea.hbm %s1420_s0, 512  ;;  %p1074_p13 = scmp.lt.s32.totalorder %s1306_s10, %s1420_s0 }
  0x37   : > { %p1071_p9 = pnand %p1070_p7, %p1069_p11  ;;  %p1075_p0 = scmp.lt.s32.totalorder %s1073_s29, %s1068_s16 }
  0x39   : > { %p1072_p12 = pneg %p1071_p9  ;;  %p1076_p10 = por %p1075_p0, %p1074_p13 }
  0x3b   : > { %p1077_p3 = pnand %p1076_p10, %p1072_p12 }
  0x3d   : > { %1080 = shalt.err (!%p1077_p3)
}
  0x3e   : > { %s1081_s28 = scalar_lea.vmem %s1308_s12, 256  ;;  %s1170_s11 = smov [#allocation3]  }
  0x3f   : > { %p1082_p1 = scmp.ne.s32.totalorder %s1308_s12, %s1081_s28  ;;  %s1086_s8 = sshll.u32 %s1170_s11, 4  ;;  %s1087_s8 = int_to_ptr.vmem [resolvable:$false] %s1086_s8 }
  0x40   : > { %s1088_s17 = scalar_lea.vmem %s1087_s8, 512  ;;  %p1089_p9 = scmp.lt.s32.totalorder %s1308_s12, %s1087_s8 }
  0x41   : > { %p1084_p6 = pnand %p1082_p1, %p1070_p7  ;;  %p1090_p5 = scmp.lt.s32.totalorder %s1088_s17, %s1081_s28 }
  0x43   : > { %p1085_p11 = pneg %p1084_p6  ;;  %p1091_p4 = por %p1090_p5, %p1089_p9 }
  0x45   : > { %p1092_p8 = pnand %p1091_p4, %p1085_p11 }
  0x47   : > { %1095 = shalt.err (!%p1092_p8)
}
  0x48   : > { %s1437_s16 = smov 128   ;;  %p1438_p1 = scmp.ne.s32.totalorder %s1433_s26, 0 }
  0x49   : > { %966 = dma.hbm_to_vmem [thread:$0]  (!%p1310_p2), %s1306_s10, 256, %s1308_s12, %s1314_s14, %s1437_s16, %s1437_s16, %s1169_s9  }
  0x4a   : > { %231 = sbr.rel (%p1438_p1) target bundleno = 533 (0x215), region = 40  ;;  %s1341_s30 = sand.u32 (!%p1438_p1), 1, %s1156_s19  }
  0x4b   : > { %s785_s8 = sshll.u32 (!%p1438_p1), %s1341_s30, 4  ;;  %s234_s29 = scalar_lea.sflag (!%p1438_p1), [#allocation4], %s1341_s30 }
  0x4c   : > { %s237_s13 = scalar_lea.vmem (!%p1438_p1), [#allocation3], %s785_s8  ;;  %p1439_p4 = scmp.ne.s32.totalorder (!%p1438_p1), %s1431_s24, 0 }
  0x4f   : > { %1139 = dma.done.wait (%p1439_p4), %s234_s29, 256  }
  0x50   : > { %1141 = vsyncadd (%p1439_p4), %s234_s29, 4294967040  ;;  %p1440_p6 = scmp.eq.s32.totalorder %s1226_s22, 0 }
  0x52   : > { %1143 = dma.done.wait (%p1440_p6), [#allocation7], 5120   ;;  %p1441_p8 = pmov %p1440_p6 }
  0x53   : > { %vm272_vm0 = vcmask 516096   ;;  %v1171_v0 = vmov 0.0   ;;  %v300_v1 = vld [vmem:[#allocation6 + $0x78] sm:$0xff]  ;;  %v299_v3 = vld [vmem:[#allocation6 + $0x70] sm:$0xff]  ;;  %v298_v5 = vld [vmem:[#allocation6 + $0x68] sm:$0xff]  ;;  %vm277_vm1 = vcmask 523264  }
  0x54   : > { %1145 = vsyncadd (%p1441_p8), [#allocation7], 4294962176  ;;  %273 = vst.msk [vmem:[#allocation2] sm:$0x1] %vm272_vm0, %v1171_v0  ;;  %v289_v2 = vld [vmem:[#allocation6 + $0x38] sm:$0xff]  ;;  %852 = vmatprep.subr.mxu0 %v300_v1  ;;  %v288_v4 = vld [vmem:[#allocation6 + $0x30] sm:$0xff] }
  0x55   : > { %274 = vst.msk [vmem:[#allocation2 + $0x11] sm:$0x1] %vm272_vm0, %v1171_v0  ;;  %871 = vmatprep.subr.mxu1 %v289_v2  ;;  %853 = vmatpush3.msra.mxu0 %v300_v1  ;;  %v287_v6 = vld [vmem:[#allocation6 + $0x28] sm:$0xff]  ;;  %v297_v7 = vld [vmem:[#allocation6 + $0x60] sm:$0xff]  ;;  %v296_v11 = vld [vmem:[#allocation6 + $0x58] sm:$0xff]  ;;  %s271_s12 = scalar_lea.vmem [#allocation9], %s785_s8 }
  0x56   : > { %872 = vmatpush3.msra.mxu1 %v289_v2  ;;  %854 = vmatprep.subr.mxu0 %v299_v3  ;;  %v286_v8 = vld [vmem:[#allocation6 + $0x20] sm:$0xff]  ;;  %v276_v10 = vld [vmem:[%s237_s13 + $0x8] sm:$0xff]  ;;  %v295_v13 = vld [vmem:[#allocation6 + $0x50] sm:$0xff]  ;;  %s684_s14 = sshll.u32 %s271_s12, 4  ;;  %s803_s6 = sshll.u32 %s1226_s22, 8  ;;  %s1372_s14 = int_to_ptr.vmem [resolvable:$true] %s684_s14 }
  0x57   : > { %873 = vmatprep.subr.mxu1 %v288_v4  ;;  %855 = vmatpush3.msra.mxu0 %v299_v3  ;;  %v275_v9 = vld [vmem:[%s237_s13] sm:$0xff]  ;;  %v285_v12 = vld [vmem:[#allocation6 + $0x18] sm:$0xff]  ;;  %279 = vst.msk [vmem:[#allocation2 + $0x9] sm:$0xff] %vm277_vm1, %v276_v10  ;;  %v294_v15 = vld [vmem:[#allocation6 + $0x48] sm:$0xff]  ;;  %s1377_s11 = scalar_lea.hbm %s1425_s5, %s803_s6  ;;  %s671_s17 = scalar_lea.sflag [#allocation5], %s1341_s30 }
  0x58   : > { %874 = vmatpush3.msra.mxu1 %v288_v4  ;;  %856 = vmatprep.subr.mxu0 %v298_v5  ;;  %278 = vst.msk [vmem:[#allocation2 + $0x1] sm:$0xff] %vm277_vm1, %v275_v9  ;;  %v284_v14 = vld [vmem:[#allocation6 + $0x10] sm:$0xff]  ;;  %v283_v16 = vld [vmem:[#allocation6 + $0x8] sm:$0xff]  ;;  %v293_v17 = vld [vmem:[#allocation6 + $0x40] sm:$0xff]  ;;  %s1096_s16 = scalar_lea.vmem %s1372_s14, 256  ;;  %p1442_p2 = scmp.ne.s32.totalorder %s1435_s23, 0 }
  0x59   : > { %875 = vmatprep.subr.mxu1 %v287_v6  ;;  %857 = vmatpush3.msra.mxu0 %v298_v5  ;;  %v282_v18 = vld [vmem:[#allocation6] sm:$0xff]  ;;  %v473_v23 = vld [vmem:[#allocation6 + $0xb8] sm:$0xff]  ;;  %v472_v26 = vld [vmem:[#allocation6 + $0xb0] sm:$0xff]  ;;  %p1097_p5 = scmp.ne.s32.totalorder %s1372_s14, %s1096_s16  ;;  %s1172_s22 = smov [#allocation9]  }
  0x5a   : > { %876 = vmatpush3.msra.mxu1 %v287_v6  ;;  %858 = vmatprep.subr.mxu0 %v297_v7  ;;  %v583_v25 = vld [vmem:[#allocation8 + $0x78] sm:$0xff]  ;;  %v582_v27 = vld [vmem:[#allocation8 + $0x70] sm:$0xff]  ;;  %v471_v28 = vld [vmem:[#allocation6 + $0xa8] sm:$0xff]  ;;  %s1100_s8 = sshll.u32 %s1172_s22, 4  ;;  %s1101_s8 = int_to_ptr.vmem [resolvable:$false] %s1100_s8 }
  0x5b   : > { %877 = vmatprep.subr.mxu1 %v286_v8  ;;  %859 = vmatpush3.msra.mxu0 %v297_v7  ;;  %v581_v29 = vld [vmem:[#allocation8 + $0x68] sm:$0xff]  ;;  %v470_v30 = vld [vmem:[#allocation6 + $0xa0] sm:$0xff]  ;;  %v469_v31 = vld [vmem:[#allocation6 + $0x98] sm:$0xff]  ;;  %p1098_p7 = pnand %p1097_p5, %p1442_p2  ;;  %s1102_s29 = scalar_lea.vmem %s1101_s8, 512 }
  0x5c   : > { %878 = vmatpush3.msra.mxu1 %v286_v8  ;;  %860 = vmatprep.subr.mxu0 %v296_v11  ;;  %v468_v32 = vld [vmem:[#allocation6 + $0x90] sm:$0xff]  ;;  %v467_v33 = vld [vmem:[#allocation6 + $0x88] sm:$0xff]  ;;  %v466_v34 = vld [vmem:[#allocation6 + $0x80] sm:$0xff]  ;;  %p1103_p13 = scmp.lt.s32.totalorder %s1372_s14, %s1101_s8  ;;  %p1104_p0 = scmp.lt.s32.totalorder %s1102_s29, %s1096_s16 }
  0x5d   : > { %879 = vmatprep.subr.mxu1 %v285_v12  ;;  %861 = vmatpush3.msra.mxu0 %v296_v11  ;;  %v580_v36 = vld [vmem:[#allocation8 + $0x60] sm:$0xff]  ;;  %v579_v37 = vld [vmem:[#allocation8 + $0x58] sm:$0xff]  ;;  %v578_v38 = vld [vmem:[#allocation8 + $0x50] sm:$0xff]  ;;  %p1099_p12 = pneg %p1098_p7 }
  0x5e   : > { %880 = vmatpush3.msra.mxu1 %v285_v12  ;;  %862 = vmatprep.subr.mxu0 %v295_v13  ;;  %v291_v21 = vld [vmem:[#allocation2 + $0x9] sm:$0xff]  ;;  %v577_v39 = vld [vmem:[#allocation8 + $0x48] sm:$0xff]  ;;  %v576_v40 = vld [vmem:[#allocation8 + $0x40] sm:$0xff]  ;;  %p1105_p10 = por %p1104_p0, %p1103_p13 }
  0x5f   : > { %881 = vmatprep.subr.mxu1 %v284_v14  ;;  %863 = vmatpush3.msra.mxu0 %v295_v13  ;;  %v290_v19 = vld [vmem:[#allocation2 + $0x1] sm:$0xff]  ;;  %v464_v35 = vld [vmem:[#allocation2 + $0xa] sm:$0xff]  ;;  %v572_v44 = vld [vmem:[#allocation8 + $0x20] sm:$0xff] }
  0x60   : > { %882 = vmatpush3.msra.mxu1 %v284_v14  ;;  %864 = vmatprep.subr.mxu0 %v294_v15  ;;  %v280_v20 = vld [vmem:[#allocation2] sm:$0xff]  ;;  %v281_v22 = vld [vmem:[#allocation2 + $0x8] sm:$0xff]  ;;  %v575_v41 = vld [vmem:[#allocation8 + $0x38] sm:$0xff]  ;;  %p1106_p3 = pnand %p1105_p10, %p1099_p12 }
  0x61   : > { %883 = vmatprep.subr.mxu1 %v283_v16  ;;  %865 = vmatpush3.msra.mxu0 %v294_v15  ;;  %v463_v24 = vld [vmem:[#allocation2 + $0x2] sm:$0xff]  ;;  %v571_v45 = vld [vmem:[#allocation8 + $0x18] sm:$0xff]  ;;  %v568_v48 = vld [vmem:[#allocation8] sm:$0xff] }
  0x62   : > { %884 = vmatpush3.msra.mxu1 %v283_v16  ;;  %866 = vmatprep.subr.mxu0 %v293_v17  ;;  %v574_v42 = vld [vmem:[#allocation8 + $0x30] sm:$0xff]  ;;  %v573_v43 = vld [vmem:[#allocation8 + $0x28] sm:$0xff] }
  0x63   : > { %885 = vmatprep.subr.mxu1 %v282_v18  ;;  %867 = vmatpush3.msra.mxu0 %v293_v17  ;;  %v570_v46 = vld [vmem:[#allocation8 + $0x10] sm:$0xff]  ;;  %v569_v47 = vld [vmem:[#allocation8 + $0x8] sm:$0xff] }
  0x64   : > { %868 = vmatprep.mubr.msk.f32.mxu0 %vm277_vm1, %v290_v19  ;;  %886 = vmatpush3.msra.mxu1 %v282_v18  ;;  %v795_v57 = vld [vmem:[%s1422_s2] ss:$0 sm:$0xff] }
  0x65   : > { %887 = vmatprep.mubr.msk.f32.mxu1 %vm277_vm1, %v280_v20  ;;  %869 = vmatmul.mubr.msk.f32.vlgmr.msra.gmra.mxu0 %vm277_vm1, %v291_v21  ;;  %v796_v0 = vld [vmem:[%s1424_s4] ss:$0 sm:$0xff] }
  0x66   : > { %888 = vmatmul.mubr.msk.f32.vlgmr.msra.gmra.mxu1 %vm277_vm1, %v281_v22  ;;  %890 = vmatprep.subr.mxu0 %v473_v23 }
  0x67   : > { %906 = vmatprep.mubr.msk.f32.mxu0 %vm277_vm1, %v463_v24  ;;  %891 = vmatpush3.msra.mxu0 %v473_v23 }
  0x68   : > { %909 = vmatprep.subr.mxu1 %v583_v25  ;;  %892 = vmatprep.subr.mxu0 %v472_v26 }
  0x69   : > { %910 = vmatpush3.msra.mxu1 %v583_v25  ;;  %893 = vmatpush3.msra.mxu0 %v472_v26 }
  0x6a   : > { %911 = vmatprep.subr.mxu1 %v582_v27  ;;  %894 = vmatprep.subr.mxu0 %v471_v28 }
  0x6b   : > { %912 = vmatpush3.msra.mxu1 %v582_v27  ;;  %895 = vmatpush3.msra.mxu0 %v471_v28 }
  0x6c   : > { %913 = vmatprep.subr.mxu1 %v581_v29  ;;  %896 = vmatprep.subr.mxu0 %v470_v30 }
  0x6d   : > { %914 = vmatpush3.msra.mxu1 %v581_v29  ;;  %897 = vmatpush3.msra.mxu0 %v470_v30 }
  0x6e   : > { %898 = vmatprep.subr.mxu0 %v469_v31  ;;  %915 = vmatprep.subr.mxu1 %v580_v36 }
  0x6f   : > { %899 = vmatpush3.msra.mxu0 %v469_v31  ;;  %916 = vmatpush3.msra.mxu1 %v580_v36 }
  0x70   : > { %900 = vmatprep.subr.mxu0 %v468_v32  ;;  %917 = vmatprep.subr.mxu1 %v579_v37 }
  0x71   : > { %901 = vmatpush3.msra.mxu0 %v468_v32  ;;  %918 = vmatpush3.msra.mxu1 %v579_v37 }
  0x72   : > { %902 = vmatprep.subr.mxu0 %v467_v33  ;;  %919 = vmatprep.subr.mxu1 %v578_v38 }
  0x73   : > { %903 = vmatpush3.msra.mxu0 %v467_v33  ;;  %920 = vmatpush3.msra.mxu1 %v578_v38 }
  0x74   : > { %904 = vmatprep.subr.mxu0 %v466_v34  ;;  %921 = vmatprep.subr.mxu1 %v577_v39 }
  0x75   : > { %905 = vmatpush3.msra.mxu0 %v466_v34  ;;  %922 = vmatpush3.msra.mxu1 %v577_v39 }
  0x76   : > { %907 = vmatmul.mubr.msk.f32.vlgmr.msra.gmra.mxu0 %vm277_vm1, %v464_v35  ;;  %923 = vmatprep.subr.mxu1 %v576_v40 }
  0x77   : > { %924 = vmatpush3.msra.mxu1 %v576_v40 }
  0x78   : > { %925 = vmatprep.subr.mxu1 %v575_v41 }
  0x79   : > { %926 = vmatpush3.msra.mxu1 %v575_v41 }
  0x7a   : > { %927 = vmatprep.subr.mxu1 %v574_v42 }
  0x7b   : > { %928 = vmatpush3.msra.mxu1 %v574_v42 }
  0x7c   : > { %929 = vmatprep.subr.mxu1 %v573_v43 }
  0x7d   : > { %930 = vmatpush3.msra.mxu1 %v573_v43 }
  0x7e   : > { %931 = vmatprep.subr.mxu1 %v572_v44 }
  0x7f   : > { %932 = vmatpush3.msra.mxu1 %v572_v44 }
  0x80   : > { %933 = vmatprep.subr.mxu1 %v571_v45 }
  0x81   : > { %934 = vmatpush3.msra.mxu1 %v571_v45 }
  0x82   : > { %935 = vmatprep.subr.mxu1 %v570_v46 }
  0x83   : > { %936 = vmatpush3.msra.mxu1 %v570_v46 }
  0x84   : > { %937 = vmatprep.subr.mxu1 %v569_v47 }
  0x85   : > { %938 = vmatpush3.msra.mxu1 %v569_v47 }
  0x86   : > { %939 = vmatprep.subr.mxu1 %v568_v48 }
  0x87   : > { %940 = vmatpush3.msra.mxu1 %v568_v48 }
 0x125   : > { %v870_v49 = vpop.f32.mrf.mxu0 }
 0x126   : > { %v889_v50 = vpop.f32.mrf.mxu1 }
 0x127   : > { %v373_v51 = vpop.f32.mrf.mxu0  ;;  %v460_v53 = vadd.f32 %v889_v50, %v870_v49 }
 0x128   : > { %v454_v52 = vpop.f32.mrf.mxu1 }
 0x129   : > { %v455_v55 = vadd.f32 %v454_v52, %v373_v51 }
 0x136   : > { %v908_v54 = vpop.f32.mrf.mxu0 }
 0x137   : > { %v556_v56 = vadd.f32 %v908_v54, %v460_v53 }
 0x138   : > { %v546_v58 = vpop.f32.mrf.mxu0 }
 0x139   : > { %v555_v59 = vadd.f32 %v546_v58, %v455_v55  ;;  %v565_v60 = vadd.f32 %v795_v57, %v556_v56 }
 0x13b   : > { %v564_v61 = vadd.f32 %v795_v57, %v555_v59  ;;  %v567_v63 = vmax.f32 %v565_v60, 0.0 }
 0x13d   : > { %v566_v62 = vmax.f32 %v564_v61, 0.0 }
 0x13f   : > { %941 = vmatprep.mubr.f32.mxu1 %v566_v62 }
 0x140   : > { %942 = vmatmul.mubr.f32.vlgmr.msra.gmra.mxu1 %v567_v63 }
 0x200   : > { %v943_v1 = vpop.f32.mrf.mxu1 }
 0x201   : > { %v663_v2 = vadd.f32 %v943_v1, %v796_v0 }
 0x202   : > { %v657_v3 = vpop.f32.mrf.mxu1 }
 0x203   : > { %v667_v4 = vmax.f32 %v663_v2, 0.0  ;;  %v658_v5 = vadd.f32 %v796_v0, %v657_v3 }
 0x205   : > { %669 = vst [vmem:[%s271_s12 + $0x8] sm:$0xff] %v667_v4  ;;  %v666_v6 = vmax.f32 %v658_v5, 0.0 }
 0x207   : > { %668 = vst [vmem:[%s271_s12] sm:$0xff] %v666_v6 }
 0x208   : > { %1109 = shalt.err (!%p1106_p3)
}
 0x209   : > { %s1110_s13 = scalar_lea.hbm %s1377_s11, 256  ;;  %s1114_s9 = scalar_lea.hbm %s1425_s5, 512 }
 0x20a   : > { %p1111_p11 = scmp.ne.s32.totalorder %s1377_s11, %s1110_s13  ;;  %p1115_p4 = scmp.lt.s32.totalorder %s1377_s11, %s1425_s5 }
 0x20b   : > { %p1116_p6 = scmp.lt.s32.totalorder %s1114_s9, %s1110_s13 }
 0x20c   : > { %p1112_p9 = pnand %p1111_p11, %p1442_p2 }
 0x20d   : > { %p1117_p8 = por %p1116_p6, %p1115_p4 }
 0x20e   : > { %p1113_p1 = pneg %p1112_p9 }
 0x210   : > { %p1118_p5 = pnand %p1117_p8, %p1113_p1 }
 0x212   : > { %1121 = shalt.err (!%p1118_p5)
}
 0x213   : > { %s1173_s6 = smov 128   ;;  %s1174_s7 = smov 8  }
 0x214   : > { %954 = dma.vmem_to_hbm [thread:$0]  (%p1442_p2), %s1372_s14, 256, %s1377_s11, %s671_s17, %s1173_s6, %s1173_s6, %s1174_s7  }
 0x215 PF: > { %s699_s28 = sand.u32 1, %s1152_s18   ;;  %p1443_p7 = scmp.ne.s32.totalorder %s1432_s25, 0 }
 0x216   : > { %p1444_p12 = scmp.ge.s32.totalorder %s1164_s21, 2  ;;  %s700_s16 = scalar_lea.sflag [#allocation5], %s699_s28 }
 0x218   : > { %p968_p13 = pnand %p1444_p12, %p1443_p7 }
 0x21a   : > { %p969_p0 = pneg %p968_p13 }
 0x21c   : > { %1147 = dma.done.wait (%p969_p0), %s700_s16, 256  }
 0x21d   : > { %1149 = vsyncadd (%p969_p0), %s700_s16, 4294967040  ;;  %p19_p10 = scmp.ge.s32.totalorder %s1283_s15, 4   ;;  %s1445_s18 = smov %s1156_s19 }
 0x21e   : > { %s1446_s19 = smov %s1160_s20  ;;  %s1447_s20 = smov %s1299_s27 }
 0x21f   : > { %s1448_s21 = smov %s1283_s15  ;;  %21 = sbr.rel (!%p19_p10) target bundleno = 6 (0x6), region = 95 }
 0x224   :  { %705 = vsyncpa [#allocation4], 1 }
 0x225   :  { %707 = vsyncpa [#allocation4 + $0x1], 1 }
 0x226   :  { %708 = vsyncpa [#allocation7], 1 }
 0x227   :  { %709 = vsyncpa [#allocation5], 1 }
 0x228   :  { %711 = vsyncpa [#allocation5 + $0x1], 1 }

</bundles_post_ra>
